<compile_context>
chip_gen: v6e
topology: v6e:2x2x1
jax: 0.10.0
libtpu: 0.0.40
codegen_flags: <defaults>
</compile_context>

<pallas_src>
import functools

import jax
import jax.numpy as jnp
from jax.experimental import pallas as pl
from jax.experimental.pallas import tpu as pltpu


def _round_up(a, b):
    return (a + b - 1) // b * b


def _label_smoothing_kernel(n_ref, x_ref, tgt_ref, out_ref, *, confidence,
                            smoothing):
    i = pl.program_id(0)
    n_valid = n_ref[0]                                  # true batch size (SMEM)

    x = x_ref[...]                                      # (TM, C), f32 or bf16
    tm, c = x.shape
    tgt = tgt_ref[...]                                  # (TM, 1) int32

    # Numerically-stable logsumexp over classes; logprobs never materialized.
    m = jnp.max(x, axis=-1, keepdims=True)                                  # (TM,1)
    es = jnp.sum(jnp.exp((x - m).astype(jnp.float32)), axis=-1,
                 keepdims=True)                                             # (TM,1)
    lse = m.astype(jnp.float32) + jnp.log(es)                               # (TM,1)

    # Fused weighted reduction (uses conf + s == 1):
    #   conf*(lse - x[tgt]) + s*(lse - mean(x)) = lse - sum_j x_j * w_j,
    #   w_j = conf*[j==tgt] + s/C
    col = jax.lax.broadcasted_iota(jnp.int32, (tm, c), 1)
    w = jnp.where(col == tgt, confidence + smoothing / c, smoothing / c)    # (TM,C) f32
    wsum = jnp.sum(x.astype(jnp.float32) * w, axis=-1, keepdims=True)       # (TM,1)

    per_row = lse - wsum                                                    # (TM,1)

    # Mask rows past the true batch size (the ragged last tile reads undefined
    # data).  Must stay a select — NaN/Inf in the unselected branch does not
    # propagate through jnp.where — and must happen before the block sum.
    row = i * tm + jax.lax.broadcasted_iota(jnp.int32, (tm, 1), 0)
    per_row = jnp.where(row < n_valid, per_row, 0.0)

    # One lane-dense (1, 128) partial-sum block per grid step (sum in lane 0).
    lane = jax.lax.broadcasted_iota(jnp.int32, (1, 128), 1)
    out_ref[...] = jnp.where(lane == 0, jnp.sum(per_row), 0.0)


def label_smoothing_loss(x, target, smoothing=0.1, *, tile_m=None,
                         vmem_budget_bytes=20 << 20):
    """x: (N, C) float logits (f32 or bf16); target: (N,) ints -> scalar f32."""
    n, c = x.shape
    confidence = 1.0 - smoothing

    if tile_m is None:
        # Per-row VMEM bytes:
        #   2x double-buffered x tile              : 2 * C * itemsize
        #   2x double-buffered (TM,1) int32 target : lane-pads to 2 * 512 B
        #   ~4 live f32 (TM,C) temps in the kernel : 4 * C * 4
        per_row_bytes = 2 * (c * x.dtype.itemsize + 512) + 4 * c * 4
        budget_rows = max(8, vmem_budget_bytes // per_row_bytes)
        # Keep >= ~4 blocks when N allows so the ("parallel",) grid axis can
        # shard across v7x's two TensorCores and the DMA pipeline has overlap.
        tile_m = min(budget_rows, max(8, pl.cdiv(n, 4)))
    tile_m = int(min(tile_m, _round_up(n, 8)))
    tile_m = max(8, (tile_m // 8) * 8)

    num_blocks = pl.cdiv(n, tile_m)        # ragged tail handled in-kernel

    tgt = target.astype(jnp.int32).reshape(n, 1)
    n_valid = jnp.array([n], dtype=jnp.int32)

    kernel = functools.partial(_label_smoothing_kernel,
                               confidence=confidence, smoothing=smoothing)

    partials = pl.pallas_call(
        kernel,
        out_shape=jax.ShapeDtypeStruct((1, 128 * num_blocks), jnp.float32),
        grid_spec=pltpu.PrefetchScalarGridSpec(
            num_scalar_prefetch=1,          # n_valid -> SMEM
            grid=(num_blocks,),
            in_specs=[
                pl.BlockSpec((tile_m, c), lambda i, n_ref: (i, 0)),
                # (TM,1) int32 target tile: lane-pads to 512 B/row in VMEM,
                # which the budget above accounts for.
                # TODO(synk): for small C, pack targets lane-dense as
                # (num_blocks, tile_m) and relayout in-kernel to reclaim VMEM.
                pl.BlockSpec((tile_m, 1), lambda i, n_ref: (i, 0)),
            ],
            out_specs=pl.BlockSpec((1, 128), lambda i, n_ref: (0, i)),
        ),
        compiler_params=pltpu.CompilerParams(
            dimension_semantics=("parallel",),
            # Explicit limit: above v5e's 16 MiB scoped default, comfortably
            # under v7x's 64 MiB physical VMEM per TensorCore.
            vmem_limit_bytes=32 << 20,
        ),
    )(n_valid, x, tgt)

    # Finish the mean in plain JAX (exact: only lane 0 of each block nonzero).
    return jnp.sum(partials) / n


# TODO(synk): forward-only — jax.grad through this pallas_call needs a
# custom_vjp / backward kernel (grad_x = (softmax(x) - conf*onehot - s/C) / N).


def _reference(x, target, smoothing=0.1):
    confidence = 1.0 - smoothing
    logprobs = jax.nn.log_softmax(x.astype(jnp.float32), axis=-1)
    nll = -jnp.take_along_axis(logprobs, target.astype(jnp.int32)[:, None],
                               axis=-1)[:, 0]
    smooth = -jnp.mean(logprobs, axis=-1)
    return jnp.mean(confidence * nll + smoothing * smooth)


if __name__ == "__main__":
    key = jax.random.PRNGKey(0)
    k1, k2, k3, k4 = jax.random.split(key, 4)

    # Case 1: small ragged batch (exercises the no-pad tail mask), C = 32.
    x1 = jax.random.normal(k1, (19, 32), dtype=jnp.float32)
    t1 = jax.random.randint(k2, (19,), 0, 32, dtype=jnp.int32)
    loss1 = jax.block_until_ready(label_smoothing_loss(x1, t1, smoothing=0.1))
    ref1 = _reference(x1, t1, smoothing=0.1)
    assert jnp.allclose(loss1, ref1, atol=1e-5, rtol=1e-5), (loss1, ref1)

    # Case 2: multiple row tiles with a ragged last tile.
    x2 = jax.random.normal(k3, (104, 32), dtype=jnp.float32)
    t2 = jax.random.randint(k4, (104,), 0, 32, dtype=jnp.int32)
    loss2 = jax.block_until_ready(label_smoothing_loss(x2, t2, smoothing=0.1))
    ref2 = _reference(x2, t2, smoothing=0.1)
    assert jnp.allclose(loss2, ref2, atol=1e-5, rtol=1e-5), (loss2, ref2)

    print("KERNEL_OK")
</pallas_src>

<mosaic_0001>
module attributes {stable_mosaic.version = 11 : i64} {
  func.func @_label_smoothing_kernel(%arg0: i32, %arg1: memref<1xi32, #tpu.memory_space<smem>>, %arg2: memref<8x32xf32, #tpu.memory_space<vmem>>, %arg3: memref<8x1xi32, #tpu.memory_space<vmem>>, %arg4: memref<1x128xf32, #tpu.memory_space<vmem>>) attributes {dimension_semantics = [#tpu.dimension_semantics<parallel>], iteration_bounds = array<i64: 3>, scalar_prefetch = 1 : i64, scratch_operands = 0 : i64, tpu.core_type = #tpu.core_type<tc>, window_params = [{transform_indices = @transform_0, window_bounds = array<i64: 8, 32>}, {transform_indices = @transform_1, window_bounds = array<i64: 8, 1>}, {transform_indices = @transform_2, window_bounds = array<i64: 1, 128>}]} {
    %c0 = arith.constant 0 : index
    %0 = memref.load %arg1[%c0] : memref<1xi32, #tpu.memory_space<smem>>
    %c0_0 = arith.constant 0 : index
    %c0_1 = arith.constant 0 : index
    %1 = vector.load %arg2[%c0_0, %c0_1] : memref<8x32xf32, #tpu.memory_space<vmem>>, vector<8x32xf32>
    %c0_2 = arith.constant 0 : index
    %c0_3 = arith.constant 0 : index
    %2 = vector.load %arg3[%c0_2, %c0_3] : memref<8x1xi32, #tpu.memory_space<vmem>>, vector<8x1xi32>
    %cst = arith.constant dense<0xFF800000> : vector<8xf32>
    %3 = vector.multi_reduction <maximumf>, %1, %cst [1] : vector<8x32xf32> to vector<8xf32>
    %4 = vector.shape_cast %3 : vector<8xf32> to vector<8x1xf32>
    %5 = vector.broadcast %4 : vector<8x1xf32> to vector<8x32xf32>
    %6 = arith.subf %1, %5 : vector<8x32xf32>
    %7 = math.exp %6 : vector<8x32xf32>
    %cst_4 = arith.constant dense<0.000000e+00> : vector<8xf32>
    %8 = vector.multi_reduction <add>, %7, %cst_4 [1] : vector<8x32xf32> to vector<8xf32>
    %9 = vector.shape_cast %8 : vector<8xf32> to vector<8x1xf32>
    %10 = math.log %9 : vector<8x1xf32>
    %11 = arith.addf %4, %10 : vector<8x1xf32>
    %12 = tpu.iota {dimensions = array<i32: 1>} : vector<8x32xi32>
    %13 = vector.broadcast %2 : vector<8x1xi32> to vector<8x32xi32>
    %14 = arith.cmpi eq, %12, %13 : vector<8x32xi32>
    %cst_5 = arith.constant 0.903124988 : f32
    %cst_6 = arith.constant 3.125000e-03 : f32
    %15 = vector.broadcast %cst_5 : f32 to vector<8x32xf32>
    %16 = vector.broadcast %cst_6 : f32 to vector<8x32xf32>
    %17 = arith.select %14, %15, %16 : vector<8x32xi1>, vector<8x32xf32>
    %18 = arith.mulf %1, %17 : vector<8x32xf32>
    %cst_7 = arith.constant dense<0.000000e+00> : vector<8xf32>
    %19 = vector.multi_reduction <add>, %18, %cst_7 [1] : vector<8x32xf32> to vector<8xf32>
    %20 = vector.shape_cast %19 : vector<8xf32> to vector<8x1xf32>
    %21 = arith.subf %11, %20 : vector<8x1xf32>
    %c8_i32 = arith.constant 8 : i32
    %22 = arith.muli %arg0, %c8_i32 : i32
    %23 = tpu.iota {dimensions = array<i32: 0>} : vector<8x1xi32>
    %24 = vector.broadcast %22 : i32 to vector<8x1xi32>
    %25 = arith.addi %24, %23 : vector<8x1xi32>
    %26 = vector.broadcast %0 : i32 to vector<8x1xi32>
    %27 = arith.cmpi slt, %25, %26 : vector<8x1xi32>
    %cst_8 = arith.constant 0.000000e+00 : f32
    %28 = vector.broadcast %cst_8 : f32 to vector<8x1xf32>
    %29 = arith.select %27, %21, %28 : vector<8x1xi1>, vector<8x1xf32>
    %30 = tpu.iota {dimensions = array<i32: 1>} : vector<1x128xi32>
    %c0_i32 = arith.constant 0 : i32
    %31 = vector.broadcast %c0_i32 : i32 to vector<1x128xi32>
    %32 = arith.cmpi eq, %30, %31 : vector<1x128xi32>
    %33 = vector.shape_cast %29 : vector<8x1xf32> to vector<1x8x1xf32>
    %cst_9 = arith.constant dense<0.000000e+00> : vector<1xf32>
    %34 = vector.multi_reduction <add>, %33, %cst_9 [1, 2] : vector<1x8x1xf32> to vector<1xf32>
    %35 = vector.shape_cast %34 : vector<1xf32> to vector<1x1x1xf32>
    %36 = vector.extract %35[0, 0, 0] : f32 from vector<1x1x1xf32>
    %cst_10 = arith.constant 0.000000e+00 : f32
    %37 = vector.broadcast %36 : f32 to vector<1x128xf32>
    %38 = vector.broadcast %cst_10 : f32 to vector<1x128xf32>
    %39 = arith.select %32, %37, %38 : vector<1x128xi1>, vector<1x128xf32>
    %c0_11 = arith.constant 0 : index
    %c0_12 = arith.constant 0 : index
    %40 = vector.load %arg4[%c0_11, %c0_12] : memref<1x128xf32, #tpu.memory_space<vmem>>, vector<1x128xf32>
    tpu.vector_store %arg4[%c0_11, %c0_12], %39 {strides = array<i32>} : memref<1x128xf32, #tpu.memory_space<vmem>>, vector<1x128xf32>,
    return
  }
  func.func @transform_0(%arg0: i32, %arg1: memref<1xi32, #tpu.memory_space<smem>>) -> (i32, i32) {
    %c0_i32 = arith.constant 0 : i32
    %c0_i32_0 = arith.constant 0 : i32
    return %arg0, %c0_i32 : i32, i32
  }
  func.func @transform_1(%arg0: i32, %arg1: memref<1xi32, #tpu.memory_space<smem>>) -> (i32, i32) {
    %c0_i32 = arith.constant 0 : i32
    %c0_i32_0 = arith.constant 0 : i32
    return %arg0, %c0_i32 : i32, i32
  }
  func.func @transform_2(%arg0: i32, %arg1: memref<1xi32, #tpu.memory_space<smem>>) -> (i32, i32) {
    %c0_i32 = arith.constant 0 : i32
    %c0_i32_0 = arith.constant 0 : i32
    return %c0_i32, %arg0 : i32, i32
  }
}

</mosaic_0001>

<bundles_post_ra>
// kernel: tpu_custom_call.1
= control target key start
LH: loop header
LB: loop body
LE: loop exit
PB: predicated region body
PF: predicated region fallthrough
CT: control target
= control target key end

     0   :  { %s534_s0 = inlined_call_operand.<no memory space> [shape: s32[1], index: 0, kind: input, shape index: {}]   ;;  %s535_s1 = inlined_call_operand.vmem [shape: f32[19,32], index: 1, kind: input, shape index: {}]   ;;  %s536_s2 = inlined_call_operand.vmem [shape: s32[19,1], index: 2, kind: input, shape index: {}]   ;;  %s537_s3 = inlined_call_operand.hbm [shape: f32[1,384], index: 3, kind: output, shape index: {}]  }
   0x1   :  { %8 = sst [smem:[#allocation3]] %s534_s0 }
   0x2   :  { %9 = vsyncpa [#allocation5], 0 }
   0x3   :  { %11 = vsyncpa [#allocation5 + $0x1], 0  ;;  %s434_s14 = smov 0   ;;  %s436_s15 = smov 0  }
   0x4   :  { %s438_s16 = smov 0   ;;  %s440_s17 = smov 0  }
   0x5 LB: > { %s455_s0 = sadd.s32 4294967295, %s406_s17   ;;  %s288_s18 = sadd.s32 4294967294, %s406_s17   ;;  %s406_s17 = sphi %s440_s17, %s543_s17   ;;  %s402_s16 = sphi %s438_s16, %s542_s16   ;;  %s398_s15 = sphi %s436_s15, %s541_s15   ;;  %s394_s14 = sphi %s434_s14, %s540_s14  }
   0x6   : > { %s459_s19 = sadd.s32 1, %s406_s17   ;;  %s76_s20 = sadd.s32 1, %s402_s16 }
   0x7   : > { %s73_s21 = ssub.s32 %s406_s17, %s459_s19  ;;  %p86_p0 = scmp.ne.s32.totalorder %s402_s16, %s398_s15 }
   0x8   : > { %p74_p1 = scmp.eq.s32.totalorder %s73_s21, 0  ;;  %p87_p2 = scmp.eq.s32.totalorder %s455_s0, 2 }
   0x9   : > { %p92_p3 = scmp.ne.s32.totalorder %s398_s15, %s394_s14  ;;  %p93_p4 = scmp.eq.s32.totalorder %s288_s18, 2 }
   0xa   : > { %s470_s22 = scalar_select %p74_p1, %s402_s16, %s76_s20  }
   0xb   : > { %p472_p5 = por %p87_p2, %p86_p0  ;;  %p476_p6 = por %p93_p4, %p92_p3 }
   0xc   : > { %p291_p7 = scmp.ge.s32.totalorder %s406_s17, 1  ;;  %p125_p8 = scmp.lt.s32.totalorder %s406_s17, 4 }
   0xe   : > { %p126_p9 = pnand %p291_p7, %p125_p8 }
   0xf   : > { %p149_p10 = scmp.lt.s32.totalorder (!%p126_p9), %s455_s0, 2  ;;  %s157_s6 = sld [smem:[#allocation3]] (!%p126_p9) }
  0x10   : > { %129 = sbr.rel (%p126_p9) target bundleno = 559 (0x22f), region = 28  ;;  %s294_s7 = sshll.u32 (!%p126_p9), %s455_s0, 3 }
  0x11   : > { %s147_s8 = sand.u32 (!%p126_p9), 1, %s398_s15   ;;  %s295_s9 = sshll.u32 (!%p126_p9), %s455_s0, 4 }
  0x12   : > { %s148_s10 = scalar_lea.vmem (!%p126_p9), [#allocation4], %s147_s8  ;;  %s499_s20 = scalar_lea.hbm (!%p126_p9), %s537_s3, %s295_s9 }
  0x13   : > { %s221_s11 = sshll.u32 (!%p126_p9), %s148_s10, 4  ;;  %s209_s21 = scalar_lea.sflag (!%p126_p9), [#allocation5], %s147_s8  ;;  %s222_s11 = int_to_ptr.vmem [resolvable:$true] %s221_s11 }
  0x15   : > { %v408_v0 = vmov 0   ;;  %s150_s25 = scalar_select %p149_p10, %s455_s0, 2  ;;  %vm160_vm0 = vcmask 261120   ;;  %v173_v7 = vlaneseq  ;;  %v409_v10 = vmov 0.003125  }
  0x16   : > { %341 = vset.pattern.permute.xlu0 %v408_v0  ;;  %v188_v18 = vstv %s294_s7  ;;  %v190_v22 = vstv %s157_s6  ;;  %vm194_vm3 = vcmask 7168   ;;  %s410_s0 = smov [#allocation4]  }
  0x17   : > { %s292_s26 = sshll.u32 %s150_s25, 3  ;;  %v174_v8 = vand.u32 127, %v173_v7  ;;  %v187_v17 = vshrl.u32 %v173_v7, 7  ;;  %s346_s25 = scalar_lea.vmem %s222_s11, 16 }
  0x18   : > { %s152_s29 = scalar_lea.vmem %s535_s1, %s292_s26  ;;  %s156_s5 = scalar_lea.vmem %s536_s2, %s292_s26 }
  0x19   : > { %v158_v1 = vld [vmem:[%s152_s29] sm:$0xff]  ;;  %v189_v20 = vadd.s32 %v188_v18, %v187_v17  ;;  %vm193_vm4 = vcmp.eq.s32.totalorder %v174_v8, 0  ;;  %p347_p11 = scmp.ne.s32.totalorder %s222_s11, %s346_s25  ;;  %s350_s26 = sshll.u32 %s410_s0, 4  ;;  %s351_s26 = int_to_ptr.vmem [resolvable:$false] %s350_s26 }
  0x1a   : > { %v161_v2 = vsel %vm160_vm0, %v158_v1, -inf  ;;  %v159_v3 = vld [vmem:[%s156_s5] sm:$0xff]  ;;  %s352_s27 = scalar_lea.vmem %s351_s26, 32  ;;  %p353_p0 = scmp.lt.s32.totalorder %s222_s11, %s351_s26 }
  0x1b   : > { %162 = vmax.xlane.f32.xlu0 %v161_v2  ;;  %vm191_vm2 = vcmp.lt.s32.totalorder %v189_v20, %v190_v22  ;;  %p348_p12 = pnand %p347_p11, %p472_p5  ;;  %p354_p1 = scmp.lt.s32.totalorder %s352_s27, %s346_s25 }
  0x1d   : > { %p349_p13 = pneg %p348_p12  ;;  %p355_p2 = por %p354_p1, %p353_p0 }
  0x1f   : > { %p356_p3 = pnand %p355_p2, %p349_p13 }
  0x31   : > { %176 = vperm.xlu0 %341, %v159_v3  }
  0xa4   : > { %v163_v4 = vpop.xlane.xlu0 %162 }
  0xa5   : > { %v164_v5 = vsub.f32 %v158_v1, %v163_v4 }
  0xa7   : > { %v165_v6 = vmul.f32 1.442695, %v164_v5 }
  0xa9   : > { %342 = vpow2.f32 %v165_v6 }
  0xac   : > { %v177_v9 = vpop.permute.xlu0 %176 }
  0xad   : > { %vm178_vm1 = vcmp.eq.s32.totalorder %v174_v8, %v177_v9 }
  0xae   : > { %v179_v11 = vsel %vm178_vm1, 0.903125, %v409_v10 }
  0xaf   : > { %v180_v12 = vmul.f32 %v179_v11, %v158_v1 }
  0xb1   : > { %v181_v15 = vsel %vm160_vm0, %v180_v12, 0.0 }
  0xb6   : > { %v343_v13 = vpop.eup %342 }
  0xb7   : > { %v167_v14 = vsel %vm160_vm0, %v343_v13, 0.0 }
  0xb8   : > { %168 = vadd.xlane.f32.xlu1 %v167_v14 }
  0xbc   : > { %182 = vadd.xlane.f32.xlu1 %v181_v15 }
 0x141   : > { %v169_v16 = vpop.xlane.xlu1 %168 }
 0x142   : > { %344 = vlog2.f32 %v169_v16 }
 0x145   : > { %v183_v23 = vpop.xlane.xlu1 %182 }
 0x14f   : > { %v345_v19 = vpop.eup %344 }
 0x150   : > { %v171_v21 = vmul.f32 0.6931472, %v345_v19 }
 0x152   : > { %v172_v24 = vadd.f32 %v171_v21, %v163_v4 }
 0x154   : > { %v184_v25 = vsub.f32 %v172_v24, %v183_v23 }
 0x156   : > { %v192_v26 = vsel %vm191_vm2, %v184_v25, 0.0 }
 0x157   : > { %v195_v27 = vsel %vm194_vm3, %v192_v26, 0.0 }
 0x158   : > { %196 = vadd.xlane.f32.xlu1 %v195_v27 }
 0x1e1   : > { %v197_v28 = vpop.xlane.xlu1 %196 }
 0x1e2   : > { %v198_v29 = vrot.slane %v197_v28, 4 }
 0x1e4   : > { %v199_v30 = vadd.f32 %v198_v29, %v197_v28 }
 0x1e6   : > { %v200_v31 = vrot.slane %v199_v30, 2 }
 0x1e8   : > { %v201_v32 = vadd.f32 %v200_v31, %v199_v30 }
 0x1ea   : > { %v202_v33 = vrot.slane %v201_v32, 1 }
 0x1ec   : > { %v203_v34 = vadd.f32 %v202_v33, %v201_v32 }
 0x1ee   : > { %298 = vpush %v203_v34 }
 0x21f   : > { %s299_s12 = spop %298 }
 0x220   : > { %v205_v35 = vstv %s299_s12 }
 0x221   : > { %v206_v36 = vsel %vm193_vm4, %v205_v35, 0.0 }
 0x222   : > { %207 = vst [vmem:[%s148_s10] sm:$0x1] %v206_v36 }
 0x223   : > { %359 = shalt.err (!%p356_p3)
}
 0x224   : > { %s360_s28 = scalar_lea.hbm %s499_s20, 16  ;;  %s364_s4 = scalar_lea.hbm %s537_s3, 48 }
 0x225   : > { %p361_p4 = scmp.ne.s32.totalorder %s499_s20, %s360_s28  ;;  %p365_p9 = scmp.lt.s32.totalorder %s499_s20, %s537_s3 }
 0x226   : > { %p366_p10 = scmp.lt.s32.totalorder %s364_s4, %s360_s28 }
 0x227   : > { %p362_p7 = pnand %p361_p4, %p472_p5 }
 0x228   : > { %p367_p11 = por %p366_p10, %p365_p9 }
 0x229   : > { %p363_p8 = pneg %p362_p7 }
 0x22b   : > { %p368_p12 = pnand %p367_p11, %p363_p8 }
 0x22d   : > { %371 = shalt.err (!%p368_p12)
}
 0x22e   : > { %300 = dma.vmem_to_hbm [thread:$0]  (%p472_p5), %s222_s11, 16, %s499_s20, %s209_s21  }
 0x22f PF: > { %p306_p13 = scmp.ge.s32.totalorder %s406_s17, 2  ;;  %s233_s7 = sand.u32 1, %s394_s14  }
 0x230   : > { %s234_s8 = scalar_lea.sflag [#allocation5], %s233_s7 }
 0x231   : > { %p303_p0 = pnand %p306_p13, %p476_p6 }
 0x233   : > { %p304_p1 = pneg %p303_p0 }
 0x235   : > { %389 = dma.done.wait (%p304_p1), %s234_s8, 16  }
 0x236   : > { %391 = vsyncadd (%p304_p1), %s234_s8, 4294967280  ;;  %p14_p2 = scmp.ge.s32.totalorder %s459_s19, 5   ;;  %s540_s14 = smov %s398_s15 }
 0x237   : > { %s541_s15 = smov %s402_s16  ;;  %s542_s16 = smov %s470_s22 }
 0x238   : > { %s543_s17 = smov %s459_s19  ;;  %16 = sbr.rel (!%p14_p2) target bundleno = 5 (0x5), region = 66 }
 0x23d   :  { %238 = vsyncpa [#allocation5], 1 }
 0x23e   :  { %240 = vsyncpa [#allocation5 + $0x1], 1 }

</bundles_post_ra>
